<compile_context>
chip_gen: v7x
topology: tpu7x:2x2x1
jax: 0.10.0
libtpu: 0.0.40
codegen_flags: <defaults>
</compile_context>

<pallas_src>
import functools

import jax
import jax.numpy as jnp
from jax.experimental import pallas as pl
from jax.experimental.pallas import tpu as pltpu

_LANES = 128
_MAX_BLOCK_ROWS = 2048  # (2048, 128) f32 = 1 MiB per input block


# ----------------------------- kernel ---------------------------------------


def _fused_norm_mse_kernel(n_valid, x_ref, gt_ref, out_ref,
                           vmin, vmax, vsum, smn, sinv):
    """Two-phase fused kernel.

    grid = (2, num_blocks); phase 0 accumulates elementwise min/max, phase 1
    accumulates sum(((x - mn) / (mx - mn) - gt)^2) over valid elements.
    Padding of x equals x[0] (neutral for min/max); only the last block of
    phase 1 needs masking.
    """
    phase = pl.program_id(0)
    i = pl.program_id(1)
    last = pl.num_programs(1) - 1

    x = x_ref[...]

    # ---- phase 0, first block: init accumulators straight from the data -----
    @pl.when((phase == 0) & (i == 0))
    def _():
        vmin[...] = x
        vmax[...] = x
        vsum[...] = jnp.zeros_like(vsum)

    # ---- phase 0, other blocks: unmasked elementwise min/max (VPU only) -----
    @pl.when((phase == 0) & (i > 0))
    def _():
        vmin[...] = jnp.minimum(vmin[...], x)
        vmax[...] = jnp.maximum(vmax[...], x)

    # ---- phase 1, first step: finalize scalars (single XLU reduce each) -----
    @pl.when((phase == 1) & (i == 0))
    def _():
        mn = jnp.min(vmin[...], keepdims=True)
        mx = jnp.max(vmax[...], keepdims=True)
        smn[...] = mn
        sinv[...] = 1.0 / (mx - mn)

    # ---- phase 1, non-last blocks: fully valid, unmasked accumulation -------
    @pl.when((phase == 1) & (i != last))
    def _():
        mn = smn[0, 0]
        inv = sinv[0, 0]
        d = (x - mn) * inv - gt_ref[...]
        vsum[...] = vsum[...] + d * d

    # ---- phase 1, last block: masked tail + single reduce + scalar output ---
    @pl.when((phase == 1) & (i == last))
    def _():
        mn = smn[0, 0]
        inv = sinv[0, 0]
        rows, cols = x.shape
        row_iota = jax.lax.broadcasted_iota(jnp.int32, (rows, cols), 0)
        col_iota = jax.lax.broadcasted_iota(jnp.int32, (rows, cols), 1)
        flat_idx = (i * rows + row_iota) * cols + col_iota
        d = jnp.where(flat_idx < n_valid, (x - mn) * inv - gt_ref[...], 0.0)
        out_ref[...] = jnp.sum(vsum[...] + d * d, keepdims=True)


# ----------------------------- wrapper ---------------------------------------


def _normalized_mse(x, gt):
    """mean((minmax_normalize(x) - gt)^2), fully inside one Pallas call."""
    x_flat = jnp.ravel(x).astype(jnp.float32)
    gt_flat = jnp.ravel(gt).astype(jnp.float32)
    n = x_flat.shape[0]

    rows = -(-n // _LANES)                       # ceil(n / 128)
    rows = -(-rows // 8) * 8                     # multiple of 8 sublanes
    block_rows = min(rows, _MAX_BLOCK_ROWS)      # multiple of 8 by construction
    rows = -(-rows // block_rows) * block_rows   # multiple of block_rows
    num_blocks = rows // block_rows

    pad = rows * _LANES - n
    # Pad x with its own first element: neutral for min/max, so phase 0 needs
    # no masking. gt padding value is irrelevant (masked out in the last block).
    x2d = jnp.concatenate(
        [x_flat, jnp.full((pad,), x_flat[0], jnp.float32)]).reshape(rows, _LANES)
    gt2d = jnp.concatenate(
        [gt_flat, jnp.zeros((pad,), jnp.float32)]).reshape(rows, _LANES)

    tile_spec_x = pl.BlockSpec((block_rows, _LANES), lambda p, i: (i, 0))
    # gt is only consumed in phase 1; keep its block index pinned at 0 during
    # phase 0 so no extra DMAs are issued for it.
    tile_spec_gt = pl.BlockSpec((block_rows, _LANES), lambda p, i: (i * p, 0))
    out_spec = pl.BlockSpec((1, 1), lambda p, i: (0, 0))

    kernel = functools.partial(_fused_norm_mse_kernel, n)

    ssum = pl.pallas_call(
        kernel,
        out_shape=jax.ShapeDtypeStruct((1, 1), jnp.float32),
        grid_spec=pltpu.PrefetchScalarGridSpec(
            num_scalar_prefetch=0,
            grid=(2, num_blocks),
            in_specs=[tile_spec_x, tile_spec_gt],
            out_specs=out_spec,
            scratch_shapes=[
                pltpu.VMEM((block_rows, _LANES), jnp.float32),  # vmin
                pltpu.VMEM((block_rows, _LANES), jnp.float32),  # vmax
                pltpu.VMEM((block_rows, _LANES), jnp.float32),  # vsum
                pltpu.VMEM((1, 1), jnp.float32),                # mn scalar
                pltpu.VMEM((1, 1), jnp.float32),                # 1/(mx-mn)
            ],
        ),
        compiler_params=pltpu.CompilerParams(
            dimension_semantics=("arbitrary", "arbitrary"),
        ),
    )(x2d, gt2d)
    return ssum[0, 0] / jnp.float32(n)


@jax.jit
def mse_loss_new(lines, hough_lines, lines_gt, hough_gt):
    """Pallas equivalent of MSELoss_new.forward (batches_size unused upstream)."""
    mse_lines = _normalized_mse(lines, lines_gt)
    mse_hough = _normalized_mse(hough_lines, hough_gt)
    return mse_lines, mse_hough


# pure-JAX reference for sanity checking
def _ref(lines, hough_lines, lines_gt, hough_gt):
    def nrm(x):
        x = x.astype(jnp.float32)
        return (x - x.min()) / (x.max() - x.min())

    ml = jnp.mean((nrm(lines) - lines_gt.astype(jnp.float32)) ** 2)
    mh = jnp.mean((nrm(hough_lines) - hough_gt.astype(jnp.float32)) ** 2)
    return ml, mh


if __name__ == "__main__":
    key = jax.random.PRNGKey(0)
    k1, k2, k3, k4 = jax.random.split(key, 4)

    # NCHW-shaped synthetic inputs (detector score map + hough map).
    lines = jax.random.normal(k1, (2, 1, 16, 16), dtype=jnp.float32)
    hough_lines = jax.random.normal(k2, (2, 1, 24, 32), dtype=jnp.float32)
    lines_gt = jax.random.uniform(k3, (2, 1, 16, 16), dtype=jnp.float32)
    hough_gt = jax.random.uniform(k4, (2, 1, 24, 32), dtype=jnp.float32)

    out = mse_loss_new(lines, hough_lines, lines_gt, hough_gt)
    out = jax.block_until_ready(out)

    ref = _ref(lines, hough_lines, lines_gt, hough_gt)
    assert abs(float(out[0]) - float(ref[0])) < 1e-5, (out[0], ref[0])
    assert abs(float(out[1]) - float(ref[1])) < 1e-5, (out[1], ref[1])

    print("KERNEL_OK")
</pallas_src>

<mosaic_0001>
module attributes {stable_mosaic.version = 11 : i64} {
  func.func @_fused_norm_mse_kernel(%arg0: i32, %arg1: i32, %arg2: memref<16x128xf32, #tpu.memory_space<vmem>>, %arg3: memref<16x128xf32, #tpu.memory_space<vmem>>, %arg4: memref<1x1xf32, #tpu.memory_space<vmem>>, %arg5: memref<16x128xf32, #tpu.memory_space<vmem>>, %arg6: memref<16x128xf32, #tpu.memory_space<vmem>>, %arg7: memref<16x128xf32, #tpu.memory_space<vmem>>, %arg8: memref<1x1xf32, #tpu.memory_space<vmem>>, %arg9: memref<1x1xf32, #tpu.memory_space<vmem>>) attributes {dimension_semantics = [#tpu.dimension_semantics<arbitrary>, #tpu.dimension_semantics<arbitrary>], iteration_bounds = array<i64: 2, 1>, scalar_prefetch = 0 : i64, scratch_operands = 5 : i64, tpu.core_type = #tpu.core_type<tc>, window_params = [{transform_indices = @transform_0, window_bounds = array<i64: 16, 128>}, {transform_indices = @transform_1, window_bounds = array<i64: 16, 128>}, {pipeline_mode = #tpu.pipeline_mode<synchronous>, transform_indices = @transform_2, window_bounds = array<i64: 1, 1>}]} {
    %c0 = arith.constant 0 : index
    %c0_0 = arith.constant 0 : index
    %0 = vector.load %arg2[%c0, %c0_0] : memref<16x128xf32, #tpu.memory_space<vmem>>, vector<16x128xf32>
    %c0_i32 = arith.constant 0 : i32
    %1 = arith.cmpi eq, %arg0, %c0_i32 : i32
    %c0_i32_1 = arith.constant 0 : i32
    %2 = arith.cmpi eq, %arg1, %c0_i32_1 : i32
    %3 = arith.andi %1, %2 : i1
    %4 = arith.extui %3 : i1 to i32
    %c0_i32_2 = arith.constant 0 : i32
    %5 = arith.cmpi ne, %4, %c0_i32_2 : i32
    scf.if %5 {
      %c0_14 = arith.constant 0 : index
      %c0_15 = arith.constant 0 : index
      %26 = vector.load %arg5[%c0_14, %c0_15] : memref<16x128xf32, #tpu.memory_space<vmem>>, vector<16x128xf32>
      tpu.vector_store %arg5[%c0_14, %c0_15], %0 {strides = array<i32>} : memref<16x128xf32, #tpu.memory_space<vmem>>, vector<16x128xf32>,
      %c0_16 = arith.constant 0 : index
      %c0_17 = arith.constant 0 : index
      %27 = vector.load %arg6[%c0_16, %c0_17] : memref<16x128xf32, #tpu.memory_space<vmem>>, vector<16x128xf32>
      tpu.vector_store %arg6[%c0_16, %c0_17], %0 {strides = array<i32>} : memref<16x128xf32, #tpu.memory_space<vmem>>, vector<16x128xf32>,
      %cst = arith.constant 0.000000e+00 : f32
      %28 = vector.broadcast %cst : f32 to vector<16x128xf32>
      %c0_18 = arith.constant 0 : index
      %c0_19 = arith.constant 0 : index
      %29 = vector.load %arg7[%c0_18, %c0_19] : memref<16x128xf32, #tpu.memory_space<vmem>>, vector<16x128xf32>
      tpu.vector_store %arg7[%c0_18, %c0_19], %28 {strides = array<i32>} : memref<16x128xf32, #tpu.memory_space<vmem>>, vector<16x128xf32>,
    } else {
    }
    %c0_i32_3 = arith.constant 0 : i32
    %6 = arith.cmpi eq, %arg0, %c0_i32_3 : i32
    %c0_i32_4 = arith.constant 0 : i32
    %7 = arith.cmpi sgt, %arg1, %c0_i32_4 : i32
    %8 = arith.andi %6, %7 : i1
    %9 = arith.extui %8 : i1 to i32
    %c0_i32_5 = arith.constant 0 : i32
    %10 = arith.cmpi ne, %9, %c0_i32_5 : i32
    scf.if %10 {
      %c0_14 = arith.constant 0 : index
      %c0_15 = arith.constant 0 : index
      %26 = vector.load %arg5[%c0_14, %c0_15] : memref<16x128xf32, #tpu.memory_space<vmem>>, vector<16x128xf32>
      %27 = arith.minimumf %26, %0 : vector<16x128xf32>
      %c0_16 = arith.constant 0 : index
      %c0_17 = arith.constant 0 : index
      %28 = vector.load %arg5[%c0_16, %c0_17] : memref<16x128xf32, #tpu.memory_space<vmem>>, vector<16x128xf32>
      tpu.vector_store %arg5[%c0_16, %c0_17], %27 {strides = array<i32>} : memref<16x128xf32, #tpu.memory_space<vmem>>, vector<16x128xf32>,
      %c0_18 = arith.constant 0 : index
      %c0_19 = arith.constant 0 : index
      %29 = vector.load %arg6[%c0_18, %c0_19] : memref<16x128xf32, #tpu.memory_space<vmem>>, vector<16x128xf32>
      %30 = arith.maximumf %29, %0 : vector<16x128xf32>
      %c0_20 = arith.constant 0 : index
      %c0_21 = arith.constant 0 : index
      %31 = vector.load %arg6[%c0_20, %c0_21] : memref<16x128xf32, #tpu.memory_space<vmem>>, vector<16x128xf32>
      tpu.vector_store %arg6[%c0_20, %c0_21], %30 {strides = array<i32>} : memref<16x128xf32, #tpu.memory_space<vmem>>, vector<16x128xf32>,
    } else {
    }
    %c1_i32 = arith.constant 1 : i32
    %11 = arith.cmpi eq, %arg0, %c1_i32 : i32
    %c0_i32_6 = arith.constant 0 : i32
    %12 = arith.cmpi eq, %arg1, %c0_i32_6 : i32
    %13 = arith.andi %11, %12 : i1
    %14 = arith.extui %13 : i1 to i32
    %c0_i32_7 = arith.constant 0 : i32
    %15 = arith.cmpi ne, %14, %c0_i32_7 : i32
    scf.if %15 {
      %c0_14 = arith.constant 0 : index
      %c0_15 = arith.constant 0 : index
      %26 = vector.load %arg5[%c0_14, %c0_15] : memref<16x128xf32, #tpu.memory_space<vmem>>, vector<16x128xf32>
      %27 = vector.shape_cast %26 : vector<16x128xf32> to vector<1x16x128xf32>
      %cst = arith.constant dense<0x7F800000> : vector<1xf32>
      %28 = vector.multi_reduction <minimumf>, %27, %cst [1, 2] : vector<1x16x128xf32> to vector<1xf32>
      %29 = vector.shape_cast %28 : vector<1xf32> to vector<1x1x1xf32>
      %30 = vector.extract %29[0, 0, 0] : f32 from vector<1x1x1xf32>
      %31 = vector.broadcast %30 : f32 to vector<1x1xf32>
      %c0_16 = arith.constant 0 : index
      %c0_17 = arith.constant 0 : index
      %32 = vector.load %arg6[%c0_16, %c0_17] : memref<16x128xf32, #tpu.memory_space<vmem>>, vector<16x128xf32>
      %33 = vector.shape_cast %32 : vector<16x128xf32> to vector<1x16x128xf32>
      %cst_18 = arith.constant dense<0xFF800000> : vector<1xf32>
      %34 = vector.multi_reduction <maximumf>, %33, %cst_18 [1, 2] : vector<1x16x128xf32> to vector<1xf32>
      %35 = vector.shape_cast %34 : vector<1xf32> to vector<1x1x1xf32>
      %36 = vector.extract %35[0, 0, 0] : f32 from vector<1x1x1xf32>
      %37 = vector.broadcast %36 : f32 to vector<1x1xf32>
      %c0_19 = arith.constant 0 : index
      %c0_20 = arith.constant 0 : index
      %38 = vector.load %arg8[%c0_19, %c0_20] : memref<1x1xf32, #tpu.memory_space<vmem>>, vector<1x1xf32>
      tpu.vector_store %arg8[%c0_19, %c0_20], %31 {strides = array<i32>} : memref<1x1xf32, #tpu.memory_space<vmem>>, vector<1x1xf32>,
      %39 = arith.subf %37, %31 : vector<1x1xf32>
      %cst_21 = arith.constant 1.000000e+00 : f32
      %40 = vector.broadcast %cst_21 : f32 to vector<1x1xf32>
      %41 = arith.divf %40, %39 : vector<1x1xf32>
      %c0_22 = arith.constant 0 : index
      %c0_23 = arith.constant 0 : index
      %42 = vector.load %arg9[%c0_22, %c0_23] : memref<1x1xf32, #tpu.memory_space<vmem>>, vector<1x1xf32>
      tpu.vector_store %arg9[%c0_22, %c0_23], %41 {strides = array<i32>} : memref<1x1xf32, #tpu.memory_space<vmem>>, vector<1x1xf32>,
    } else {
    }
    %c1_i32_8 = arith.constant 1 : i32
    %16 = arith.cmpi eq, %arg0, %c1_i32_8 : i32
    %c0_i32_9 = arith.constant 0 : i32
    %17 = arith.cmpi ne, %arg1, %c0_i32_9 : i32
    %18 = arith.andi %16, %17 : i1
    %19 = arith.extui %18 : i1 to i32
    %c0_i32_10 = arith.constant 0 : i32
    %20 = arith.cmpi ne, %19, %c0_i32_10 : i32
    scf.if %20 {
      %c0_14 = arith.constant 0 : index
      %c0_15 = arith.constant 0 : index
      %26 = vector.load %arg8[%c0_14, %c0_15] : memref<1x1xf32, #tpu.memory_space<vmem>>, vector<1x1xf32>
      %27 = vector.extract %26[0, 0] : f32 from vector<1x1xf32>
      %c0_16 = arith.constant 0 : index
      %c0_17 = arith.constant 0 : index
      %28 = vector.load %arg9[%c0_16, %c0_17] : memref<1x1xf32, #tpu.memory_space<vmem>>, vector<1x1xf32>
      %29 = vector.extract %28[0, 0] : f32 from vector<1x1xf32>
      %30 = vector.broadcast %27 : f32 to vector<16x128xf32>
      %31 = arith.subf %0, %30 : vector<16x128xf32>
      %32 = vector.broadcast %29 : f32 to vector<16x128xf32>
      %33 = arith.mulf %31, %32 : vector<16x128xf32>
      %c0_18 = arith.constant 0 : index
      %c0_19 = arith.constant 0 : index
      %34 = vector.load %arg3[%c0_18, %c0_19] : memref<16x128xf32, #tpu.memory_space<vmem>>, vector<16x128xf32>
      %35 = arith.subf %33, %34 : vector<16x128xf32>
      %c0_20 = arith.constant 0 : index
      %c0_21 = arith.constant 0 : index
      %36 = vector.load %arg7[%c0_20, %c0_21] : memref<16x128xf32, #tpu.memory_space<vmem>>, vector<16x128xf32>
      %37 = arith.mulf %35, %35 : vector<16x128xf32>
      %38 = arith.addf %36, %37 : vector<16x128xf32>
      %c0_22 = arith.constant 0 : index
      %c0_23 = arith.constant 0 : index
      %39 = vector.load %arg7[%c0_22, %c0_23] : memref<16x128xf32, #tpu.memory_space<vmem>>, vector<16x128xf32>
      tpu.vector_store %arg7[%c0_22, %c0_23], %38 {strides = array<i32>} : memref<16x128xf32, #tpu.memory_space<vmem>>, vector<16x128xf32>,
    } else {
    }
    %c1_i32_11 = arith.constant 1 : i32
    %21 = arith.cmpi eq, %arg0, %c1_i32_11 : i32
    %c0_i32_12 = arith.constant 0 : i32
    %22 = arith.cmpi eq, %arg1, %c0_i32_12 : i32
    %23 = arith.andi %21, %22 : i1
    %24 = arith.extui %23 : i1 to i32
    %c0_i32_13 = arith.constant 0 : i32
    %25 = arith.cmpi ne, %24, %c0_i32_13 : i32
    scf.if %25 {
      %c0_14 = arith.constant 0 : index
      %c0_15 = arith.constant 0 : index
      %26 = vector.load %arg8[%c0_14, %c0_15] : memref<1x1xf32, #tpu.memory_space<vmem>>, vector<1x1xf32>
      %27 = vector.extract %26[0, 0] : f32 from vector<1x1xf32>
      %c0_16 = arith.constant 0 : index
      %c0_17 = arith.constant 0 : index
      %28 = vector.load %arg9[%c0_16, %c0_17] : memref<1x1xf32, #tpu.memory_space<vmem>>, vector<1x1xf32>
      %29 = vector.extract %28[0, 0] : f32 from vector<1x1xf32>
      %30 = tpu.iota {dimensions = array<i32: 0>} : vector<16x128xi32>
      %31 = tpu.iota {dimensions = array<i32: 1>} : vector<16x128xi32>
      %c16_i32 = arith.constant 16 : i32
      %32 = arith.muli %arg1, %c16_i32 : i32
      %33 = vector.broadcast %32 : i32 to vector<16x128xi32>
      %34 = arith.addi %33, %30 : vector<16x128xi32>
      %c128_i32 = arith.constant 128 : i32
      %35 = vector.broadcast %c128_i32 : i32 to vector<16x128xi32>
      %36 = arith.muli %34, %35 : vector<16x128xi32>
      %37 = arith.addi %36, %31 : vector<16x128xi32>
      %c1536_i32 = arith.constant 1536 : i32
      %38 = vector.broadcast %c1536_i32 : i32 to vector<16x128xi32>
      %39 = arith.cmpi slt, %37, %38 : vector<16x128xi32>
      %40 = vector.broadcast %27 : f32 to vector<16x128xf32>
      %41 = arith.subf %0, %40 : vector<16x128xf32>
      %42 = vector.broadcast %29 : f32 to vector<16x128xf32>
      %43 = arith.mulf %41, %42 : vector<16x128xf32>
      %c0_18 = arith.constant 0 : index
      %c0_19 = arith.constant 0 : index
      %44 = vector.load %arg3[%c0_18, %c0_19] : memref<16x128xf32, #tpu.memory_space<vmem>>, vector<16x128xf32>
      %45 = arith.subf %43, %44 : vector<16x128xf32>
      %cst = arith.constant 0.000000e+00 : f32
      %46 = vector.broadcast %cst : f32 to vector<16x128xf32>
      %47 = arith.select %39, %45, %46 : vector<16x128xi1>, vector<16x128xf32>
      %c0_20 = arith.constant 0 : index
      %c0_21 = arith.constant 0 : index
      %48 = vector.load %arg7[%c0_20, %c0_21] : memref<16x128xf32, #tpu.memory_space<vmem>>, vector<16x128xf32>
      %49 = arith.mulf %47, %47 : vector<16x128xf32>
      %50 = arith.addf %48, %49 : vector<16x128xf32>
      %51 = vector.shape_cast %50 : vector<16x128xf32> to vector<1x16x128xf32>
      %cst_22 = arith.constant dense<0.000000e+00> : vector<1xf32>
      %52 = vector.multi_reduction <add>, %51, %cst_22 [1, 2] : vector<1x16x128xf32> to vector<1xf32>
      %53 = vector.shape_cast %52 : vector<1xf32> to vector<1x1x1xf32>
      %54 = vector.extract %53[0, 0, 0] : f32 from vector<1x1x1xf32>
      %55 = vector.broadcast %54 : f32 to vector<1x1xf32>
      %c0_23 = arith.constant 0 : index
      %c0_24 = arith.constant 0 : index
      %56 = vector.load %arg4[%c0_23, %c0_24] : memref<1x1xf32, #tpu.memory_space<vmem>>, vector<1x1xf32>
      tpu.vector_store %arg4[%c0_23, %c0_24], %55 {strides = array<i32>} : memref<1x1xf32, #tpu.memory_space<vmem>>, vector<1x1xf32>,
    } else {
    }
    return
  }
  func.func @transform_0(%arg0: i32, %arg1: i32) -> (i32, i32) {
    %c0_i32 = arith.constant 0 : i32
    %c0_i32_0 = arith.constant 0 : i32
    return %arg1, %c0_i32 : i32, i32
  }
  func.func @transform_1(%arg0: i32, %arg1: i32) -> (i32, i32) {
    %0 = arith.muli %arg1, %arg0 : i32
    %c0_i32 = arith.constant 0 : i32
    %c0_i32_0 = arith.constant 0 : i32
    return %0, %c0_i32 : i32, i32
  }
  func.func @transform_2(%arg0: i32, %arg1: i32) -> (i32, i32) {
    %c0_i32 = arith.constant 0 : i32
    %c0_i32_0 = arith.constant 0 : i32
    %c0_i32_1 = arith.constant 0 : i32
    return %c0_i32, %c0_i32_0 : i32, i32
  }
}

module attributes {stable_mosaic.version = 11 : i64} {
  func.func @_fused_norm_mse_kernel(%arg0: i32, %arg1: i32, %arg2: memref<8x128xf32, #tpu.memory_space<vmem>>, %arg3: memref<8x128xf32, #tpu.memory_space<vmem>>, %arg4: memref<1x1xf32, #tpu.memory_space<vmem>>, %arg5: memref<8x128xf32, #tpu.memory_space<vmem>>, %arg6: memref<8x128xf32, #tpu.memory_space<vmem>>, %arg7: memref<8x128xf32, #tpu.memory_space<vmem>>, %arg8: memref<1x1xf32, #tpu.memory_space<vmem>>, %arg9: memref<1x1xf32, #tpu.memory_space<vmem>>) attributes {dimension_semantics = [#tpu.dimension_semantics<arbitrary>, #tpu.dimension_semantics<arbitrary>], iteration_bounds = array<i64: 2, 1>, scalar_prefetch = 0 : i64, scratch_operands = 5 : i64, tpu.core_type = #tpu.core_type<tc>, window_params = [{transform_indices = @transform_0, window_bounds = array<i64: 8, 128>}, {transform_indices = @transform_1, window_bounds = array<i64: 8, 128>}, {pipeline_mode = #tpu.pipeline_mode<synchronous>, transform_indices = @transform_2, window_bounds = array<i64: 1, 1>}]} {
    %c0 = arith.constant 0 : index
    %c0_0 = arith.constant 0 : index
    %0 = vector.load %arg2[%c0, %c0_0] : memref<8x128xf32, #tpu.memory_space<vmem>>, vector<8x128xf32>
    %c0_i32 = arith.constant 0 : i32
    %1 = arith.cmpi eq, %arg0, %c0_i32 : i32
    %c0_i32_1 = arith.constant 0 : i32
    %2 = arith.cmpi eq, %arg1, %c0_i32_1 : i32
    %3 = arith.andi %1, %2 : i1
    %4 = arith.extui %3 : i1 to i32
    %c0_i32_2 = arith.constant 0 : i32
    %5 = arith.cmpi ne, %4, %c0_i32_2 : i32
    scf.if %5 {
      %c0_14 = arith.constant 0 : index
      %c0_15 = arith.constant 0 : index
      %26 = vector.load %arg5[%c0_14, %c0_15] : memref<8x128xf32, #tpu.memory_space<vmem>>, vector<8x128xf32>
      tpu.vector_store %arg5[%c0_14, %c0_15], %0 {strides = array<i32>} : memref<8x128xf32, #tpu.memory_space<vmem>>, vector<8x128xf32>,
      %c0_16 = arith.constant 0 : index
      %c0_17 = arith.constant 0 : index
      %27 = vector.load %arg6[%c0_16, %c0_17] : memref<8x128xf32, #tpu.memory_space<vmem>>, vector<8x128xf32>
      tpu.vector_store %arg6[%c0_16, %c0_17], %0 {strides = array<i32>} : memref<8x128xf32, #tpu.memory_space<vmem>>, vector<8x128xf32>,
      %cst = arith.constant 0.000000e+00 : f32
      %28 = vector.broadcast %cst : f32 to vector<8x128xf32>
      %c0_18 = arith.constant 0 : index
      %c0_19 = arith.constant 0 : index
      %29 = vector.load %arg7[%c0_18, %c0_19] : memref<8x128xf32, #tpu.memory_space<vmem>>, vector<8x128xf32>
      tpu.vector_store %arg7[%c0_18, %c0_19], %28 {strides = array<i32>} : memref<8x128xf32, #tpu.memory_space<vmem>>, vector<8x128xf32>,
    } else {
    }
    %c0_i32_3 = arith.constant 0 : i32
    %6 = arith.cmpi eq, %arg0, %c0_i32_3 : i32
    %c0_i32_4 = arith.constant 0 : i32
    %7 = arith.cmpi sgt, %arg1, %c0_i32_4 : i32
    %8 = arith.andi %6, %7 : i1
    %9 = arith.extui %8 : i1 to i32
    %c0_i32_5 = arith.constant 0 : i32
    %10 = arith.cmpi ne, %9, %c0_i32_5 : i32
    scf.if %10 {
      %c0_14 = arith.constant 0 : index
      %c0_15 = arith.constant 0 : index
      %26 = vector.load %arg5[%c0_14, %c0_15] : memref<8x128xf32, #tpu.memory_space<vmem>>, vector<8x128xf32>
      %27 = arith.minimumf %26, %0 : vector<8x128xf32>
      %c0_16 = arith.constant 0 : index
      %c0_17 = arith.constant 0 : index
      %28 = vector.load %arg5[%c0_16, %c0_17] : memref<8x128xf32, #tpu.memory_space<vmem>>, vector<8x128xf32>
      tpu.vector_store %arg5[%c0_16, %c0_17], %27 {strides = array<i32>} : memref<8x128xf32, #tpu.memory_space<vmem>>, vector<8x128xf32>,
      %c0_18 = arith.constant 0 : index
      %c0_19 = arith.constant 0 : index
      %29 = vector.load %arg6[%c0_18, %c0_19] : memref<8x128xf32, #tpu.memory_space<vmem>>, vector<8x128xf32>
      %30 = arith.maximumf %29, %0 : vector<8x128xf32>
      %c0_20 = arith.constant 0 : index
      %c0_21 = arith.constant 0 : index
      %31 = vector.load %arg6[%c0_20, %c0_21] : memref<8x128xf32, #tpu.memory_space<vmem>>, vector<8x128xf32>
      tpu.vector_store %arg6[%c0_20, %c0_21], %30 {strides = array<i32>} : memref<8x128xf32, #tpu.memory_space<vmem>>, vector<8x128xf32>,
    } else {
    }
    %c1_i32 = arith.constant 1 : i32
    %11 = arith.cmpi eq, %arg0, %c1_i32 : i32
    %c0_i32_6 = arith.constant 0 : i32
    %12 = arith.cmpi eq, %arg1, %c0_i32_6 : i32
    %13 = arith.andi %11, %12 : i1
    %14 = arith.extui %13 : i1 to i32
    %c0_i32_7 = arith.constant 0 : i32
    %15 = arith.cmpi ne, %14, %c0_i32_7 : i32
    scf.if %15 {
      %c0_14 = arith.constant 0 : index
      %c0_15 = arith.constant 0 : index
      %26 = vector.load %arg5[%c0_14, %c0_15] : memref<8x128xf32, #tpu.memory_space<vmem>>, vector<8x128xf32>
      %27 = vector.shape_cast %26 : vector<8x128xf32> to vector<1x8x128xf32>
      %cst = arith.constant dense<0x7F800000> : vector<1xf32>
      %28 = vector.multi_reduction <minimumf>, %27, %cst [1, 2] : vector<1x8x128xf32> to vector<1xf32>
      %29 = vector.shape_cast %28 : vector<1xf32> to vector<1x1x1xf32>
      %30 = vector.extract %29[0, 0, 0] : f32 from vector<1x1x1xf32>
      %31 = vector.broadcast %30 : f32 to vector<1x1xf32>
      %c0_16 = arith.constant 0 : index
      %c0_17 = arith.constant 0 : index
      %32 = vector.load %arg6[%c0_16, %c0_17] : memref<8x128xf32, #tpu.memory_space<vmem>>, vector<8x128xf32>
      %33 = vector.shape_cast %32 : vector<8x128xf32> to vector<1x8x128xf32>
      %cst_18 = arith.constant dense<0xFF800000> : vector<1xf32>
      %34 = vector.multi_reduction <maximumf>, %33, %cst_18 [1, 2] : vector<1x8x128xf32> to vector<1xf32>
      %35 = vector.shape_cast %34 : vector<1xf32> to vector<1x1x1xf32>
      %36 = vector.extract %35[0, 0, 0] : f32 from vector<1x1x1xf32>
      %37 = vector.broadcast %36 : f32 to vector<1x1xf32>
      %c0_19 = arith.constant 0 : index
      %c0_20 = arith.constant 0 : index
      %38 = vector.load %arg8[%c0_19, %c0_20] : memref<1x1xf32, #tpu.memory_space<vmem>>, vector<1x1xf32>
      tpu.vector_store %arg8[%c0_19, %c0_20], %31 {strides = array<i32>} : memref<1x1xf32, #tpu.memory_space<vmem>>, vector<1x1xf32>,
      %39 = arith.subf %37, %31 : vector<1x1xf32>
      %cst_21 = arith.constant 1.000000e+00 : f32
      %40 = vector.broadcast %cst_21 : f32 to vector<1x1xf32>
      %41 = arith.divf %40, %39 : vector<1x1xf32>
      %c0_22 = arith.constant 0 : index
      %c0_23 = arith.constant 0 : index
      %42 = vector.load %arg9[%c0_22, %c0_23] : memref<1x1xf32, #tpu.memory_space<vmem>>, vector<1x1xf32>
      tpu.vector_store %arg9[%c0_22, %c0_23], %41 {strides = array<i32>} : memref<1x1xf32, #tpu.memory_space<vmem>>, vector<1x1xf32>,
    } else {
    }
    %c1_i32_8 = arith.constant 1 : i32
    %16 = arith.cmpi eq, %arg0, %c1_i32_8 : i32
    %c0_i32_9 = arith.constant 0 : i32
    %17 = arith.cmpi ne, %arg1, %c0_i32_9 : i32
    %18 = arith.andi %16, %17 : i1
    %19 = arith.extui %18 : i1 to i32
    %c0_i32_10 = arith.constant 0 : i32
    %20 = arith.cmpi ne, %19, %c0_i32_10 : i32
    scf.if %20 {
      %c0_14 = arith.constant 0 : index
      %c0_15 = arith.constant 0 : index
      %26 = vector.load %arg8[%c0_14, %c0_15] : memref<1x1xf32, #tpu.memory_space<vmem>>, vector<1x1xf32>
      %27 = vector.extract %26[0, 0] : f32 from vector<1x1xf32>
      %c0_16 = arith.constant 0 : index
      %c0_17 = arith.constant 0 : index
      %28 = vector.load %arg9[%c0_16, %c0_17] : memref<1x1xf32, #tpu.memory_space<vmem>>, vector<1x1xf32>
      %29 = vector.extract %28[0, 0] : f32 from vector<1x1xf32>
      %30 = vector.broadcast %27 : f32 to vector<8x128xf32>
      %31 = arith.subf %0, %30 : vector<8x128xf32>
      %32 = vector.broadcast %29 : f32 to vector<8x128xf32>
      %33 = arith.mulf %31, %32 : vector<8x128xf32>
      %c0_18 = arith.constant 0 : index
      %c0_19 = arith.constant 0 : index
      %34 = vector.load %arg3[%c0_18, %c0_19] : memref<8x128xf32, #tpu.memory_space<vmem>>, vector<8x128xf32>
      %35 = arith.subf %33, %34 : vector<8x128xf32>
      %c0_20 = arith.constant 0 : index
      %c0_21 = arith.constant 0 : index
      %36 = vector.load %arg7[%c0_20, %c0_21] : memref<8x128xf32, #tpu.memory_space<vmem>>, vector<8x128xf32>
      %37 = arith.mulf %35, %35 : vector<8x128xf32>
      %38 = arith.addf %36, %37 : vector<8x128xf32>
      %c0_22 = arith.constant 0 : index
      %c0_23 = arith.constant 0 : index
      %39 = vector.load %arg7[%c0_22, %c0_23] : memref<8x128xf32, #tpu.memory_space<vmem>>, vector<8x128xf32>
      tpu.vector_store %arg7[%c0_22, %c0_23], %38 {strides = array<i32>} : memref<8x128xf32, #tpu.memory_space<vmem>>, vector<8x128xf32>,
    } else {
    }
    %c1_i32_11 = arith.constant 1 : i32
    %21 = arith.cmpi eq, %arg0, %c1_i32_11 : i32
    %c0_i32_12 = arith.constant 0 : i32
    %22 = arith.cmpi eq, %arg1, %c0_i32_12 : i32
    %23 = arith.andi %21, %22 : i1
    %24 = arith.extui %23 : i1 to i32
    %c0_i32_13 = arith.constant 0 : i32
    %25 = arith.cmpi ne, %24, %c0_i32_13 : i32
    scf.if %25 {
      %c0_14 = arith.constant 0 : index
      %c0_15 = arith.constant 0 : index
      %26 = vector.load %arg8[%c0_14, %c0_15] : memref<1x1xf32, #tpu.memory_space<vmem>>, vector<1x1xf32>
      %27 = vector.extract %26[0, 0] : f32 from vector<1x1xf32>
      %c0_16 = arith.constant 0 : index
      %c0_17 = arith.constant 0 : index
      %28 = vector.load %arg9[%c0_16, %c0_17] : memref<1x1xf32, #tpu.memory_space<vmem>>, vector<1x1xf32>
      %29 = vector.extract %28[0, 0] : f32 from vector<1x1xf32>
      %30 = tpu.iota {dimensions = array<i32: 0>} : vector<8x128xi32>
      %31 = tpu.iota {dimensions = array<i32: 1>} : vector<8x128xi32>
      %c8_i32 = arith.constant 8 : i32
      %32 = arith.muli %arg1, %c8_i32 : i32
      %33 = vector.broadcast %32 : i32 to vector<8x128xi32>
      %34 = arith.addi %33, %30 : vector<8x128xi32>
      %c128_i32 = arith.constant 128 : i32
      %35 = vector.broadcast %c128_i32 : i32 to vector<8x128xi32>
      %36 = arith.muli %34, %35 : vector<8x128xi32>
      %37 = arith.addi %36, %31 : vector<8x128xi32>
      %c512_i32 = arith.constant 512 : i32
      %38 = vector.broadcast %c512_i32 : i32 to vector<8x128xi32>
      %39 = arith.cmpi slt, %37, %38 : vector<8x128xi32>
      %40 = vector.broadcast %27 : f32 to vector<8x128xf32>
      %41 = arith.subf %0, %40 : vector<8x128xf32>
      %42 = vector.broadcast %29 : f32 to vector<8x128xf32>
      %43 = arith.mulf %41, %42 : vector<8x128xf32>
      %c0_18 = arith.constant 0 : index
      %c0_19 = arith.constant 0 : index
      %44 = vector.load %arg3[%c0_18, %c0_19] : memref<8x128xf32, #tpu.memory_space<vmem>>, vector<8x128xf32>
      %45 = arith.subf %43, %44 : vector<8x128xf32>
      %cst = arith.constant 0.000000e+00 : f32
      %46 = vector.broadcast %cst : f32 to vector<8x128xf32>
      %47 = arith.select %39, %45, %46 : vector<8x128xi1>, vector<8x128xf32>
      %c0_20 = arith.constant 0 : index
      %c0_21 = arith.constant 0 : index
      %48 = vector.load %arg7[%c0_20, %c0_21] : memref<8x128xf32, #tpu.memory_space<vmem>>, vector<8x128xf32>
      %49 = arith.mulf %47, %47 : vector<8x128xf32>
      %50 = arith.addf %48, %49 : vector<8x128xf32>
      %51 = vector.shape_cast %50 : vector<8x128xf32> to vector<1x8x128xf32>
      %cst_22 = arith.constant dense<0.000000e+00> : vector<1xf32>
      %52 = vector.multi_reduction <add>, %51, %cst_22 [1, 2] : vector<1x8x128xf32> to vector<1xf32>
      %53 = vector.shape_cast %52 : vector<1xf32> to vector<1x1x1xf32>
      %54 = vector.extract %53[0, 0, 0] : f32 from vector<1x1x1xf32>
      %55 = vector.broadcast %54 : f32 to vector<1x1xf32>
      %c0_23 = arith.constant 0 : index
      %c0_24 = arith.constant 0 : index
      %56 = vector.load %arg4[%c0_23, %c0_24] : memref<1x1xf32, #tpu.memory_space<vmem>>, vector<1x1xf32>
      tpu.vector_store %arg4[%c0_23, %c0_24], %55 {strides = array<i32>} : memref<1x1xf32, #tpu.memory_space<vmem>>, vector<1x1xf32>,
    } else {
    }
    return
  }
  func.func @transform_0(%arg0: i32, %arg1: i32) -> (i32, i32) {
    %c0_i32 = arith.constant 0 : i32
    %c0_i32_0 = arith.constant 0 : i32
    return %arg1, %c0_i32 : i32, i32
  }
  func.func @transform_1(%arg0: i32, %arg1: i32) -> (i32, i32) {
    %0 = arith.muli %arg1, %arg0 : i32
    %c0_i32 = arith.constant 0 : i32
    %c0_i32_0 = arith.constant 0 : i32
    return %0, %c0_i32 : i32, i32
  }
  func.func @transform_2(%arg0: i32, %arg1: i32) -> (i32, i32) {
    %c0_i32 = arith.constant 0 : i32
    %c0_i32_0 = arith.constant 0 : i32
    %c0_i32_1 = arith.constant 0 : i32
    return %c0_i32, %c0_i32_0 : i32, i32
  }
}

</mosaic_0001>

<bundles_post_ra>
// kernel: mse_loss_new.3
= control target key start
LH: loop header
LB: loop body
LE: loop exit
PB: predicated region body
PF: predicated region fallthrough
CT: control target
= control target key end

     0   :  { %7 = vsyncpa [#allocation8], 0  ;;  %s519_s9 = smov 0   ;;  %s521_s10 = smov 0   ;;  %s605_s0 = inlined_call_operand.vmem [shape: f32[16,128], index: 0, kind: input, shape index: {}]   ;;  %s606_s1 = inlined_call_operand.vmem [shape: f32[16,128], index: 1, kind: input, shape index: {}]   ;;  %s607_s2 = inlined_call_operand.hbm [shape: f32[1,1], index: 2, kind: output, shape index: {}]  }
   0x1   :  { %s523_s11 = smov 0  }
   0x2 LB: > { %s390_s12 = sadd.s32 4294967295, %s500_s11   ;;  %s25_s13 = sadd.s32 1, %s496_s10  ;;  %s500_s11 = sphi %s523_s11, %s13_s11   ;;  %s496_s10 = sphi %s521_s10, %s610_s10   ;;  %s492_s9 = sphi %s519_s9, %s609_s9  }
   0x3   : > { %p27_p0 = scmp.ge.s32.totalorder %s25_s13, 2  ;;  %p395_p1 = scmp.ge.s32.totalorder %s500_s11, 1 }
   0x4   : > { %p136_p2 = scmp.lt.s32.totalorder %s500_s11, 3 }
   0x5   : > { %s612_s13 = smov (%p27_p0, %s25_s13), 0 }
   0x6   : > { %p137_p3 = pnand %p395_p1, %p136_p2 }
   0x7   : > { %v543_v0 = vld [vmem:[%s605_s0] sm:$0xff] (!%p137_p3)  ;;  %v548_v1 = vld [vmem:[%s605_s0 + $0x8] sm:$0xff] (!%p137_p3)  ;;  %p175_p4 = scmp.eq.s32.totalorder (!%p137_p3), %s492_s9, 0 }
   0x8   : > { %140 = sbr.rel (%p137_p3) target bundleno = 549 (0x225), region = 28 }
   0xf   : > { %180 = sbr.rel (!%p175_p4) target bundleno = 22 (0x16), region = 32  ;;  %181 = vst [vmem:[#allocation2] sm:$0xff] (%p175_p4), %v543_v0  ;;  %182 = vst [vmem:[#allocation2 + $0x8] sm:$0xff] (%p175_p4), %v548_v1  ;;  %v502_v2 = vmov (%p175_p4), 0.0  }
  0x10   : > { %183 = vst [vmem:[#allocation3] sm:$0xff] (%p175_p4), %v543_v0  ;;  %184 = vst [vmem:[#allocation3 + $0x8] sm:$0xff] (%p175_p4), %v548_v1 }
  0x11   : > { %185 = vst [vmem:[#allocation4] sm:$0xff] (%p175_p4), %v502_v2  ;;  %186 = vst [vmem:[#allocation4 + $0x8] sm:$0xff] (%p175_p4), %v502_v2 }
  0x16 PF: > { %p204_p5 = scmp.eq.s32.totalorder %s492_s9, 1 }
  0x17   : > { %v209_v3 = vld [vmem:[#allocation2] sm:$0xff] (%p204_p5)  ;;  %v210_v4 = vld [vmem:[#allocation2 + $0x8] sm:$0xff] (%p204_p5)  ;;  %v222_v5 = vld [vmem:[#allocation3] sm:$0xff] (%p204_p5)  ;;  %vm235_vm0 = vcmask (%p204_p5), 0  }
  0x18   : > { %208 = sbr.rel (!%p204_p5) target bundleno = 249 (0xf9), region = 40  ;;  %v211_v6 = vmin.f32 (%p204_p5), %v209_v3, %v210_v4  ;;  %v223_v7 = vld [vmem:[#allocation3 + $0x8] sm:$0xff] (%p204_p5) }
  0x19   : > { %v224_v8 = vmax.f32 (%p204_p5), %v222_v5, %v223_v7 }
  0x1a   : > { %212 = vmin.xlane.f32.xlu0 (%p204_p5), %v211_v6 }
  0x1e   : > { %225 = vmax.xlane.f32.xlu0 (%p204_p5), %v224_v8 }
  0xa7   : > { %v213_v9 = vpop.xlane.xlu0 %212 }
  0xa8   : > { %v214_v10 = vrot.slane %v213_v9, 4 }
  0xaa   : > { %v215_v11 = vmin.f32 %v213_v9, %v214_v10 }
  0xab   : > { %v226_v12 = vpop.xlane.xlu0 %225 }
  0xac   : > { %v216_v13 = vrot.slane %v215_v11, 2  ;;  %v227_v14 = vrot.slane %v226_v12, 4 }
  0xae   : > { %v228_v15 = vmax.f32 %v226_v12, %v227_v14  ;;  %v217_v16 = vmin.f32 %v215_v11, %v216_v13 }
  0xb0   : > { %v229_v17 = vrot.slane %v228_v15, 2  ;;  %v218_v18 = vrot.slane %v217_v16, 1 }
  0xb2   : > { %v230_v19 = vmax.f32 %v228_v15, %v229_v17  ;;  %v219_v20 = vmin.f32 %v217_v16, %v218_v18 }
  0xb4   : > { %404 = vpush %v219_v20  ;;  %v231_v21 = vrot.slane %v230_v19, 1 }
  0xb6   : > { %v232_v22 = vmax.f32 %v230_v19, %v231_v21 }
  0xb8   : > { %406 = vpush %v232_v22 }
  0xe5   : > { %s405_s18 = spop %404 }
  0xe6   : > { %v221_v23 = vstv %s405_s18 }
  0xe7   : > { %236 = vst.msk [vmem:[#allocation5] sm:$0x1] %vm235_vm0, %v221_v23 }
  0xe9   : > { %s407_s19 = spop %406 }
  0xea   : > { %v234_v24 = vstv %s407_s19 }
  0xeb   : > { %v237_v25 = vsub.f32 %v234_v24, %v221_v23 }
  0xed   : > { %446 = vrcp.f32 %v237_v25 }
  0xf7   : > { %v447_v26 = vpop.eup %446 }
  0xf8   : > { %240 = vst.msk [vmem:[#allocation6] sm:$0x1] %vm235_vm0, %v447_v26 }
  0xf9 PF: > { %269 = sbr.rel (!%p204_p5) target bundleno = 524 (0x20c), region = 48  ;;  %v270_v27 = vld [vmem:[#allocation5] sm:$0x1] (%p204_p5)  ;;  %v274_v29 = vlaneseq (%p204_p5)  ;;  %v295_v41 = vld [vmem:[%s606_s1] sm:$0xff] (%p204_p5)  ;;  %v296_v42 = vld [vmem:[%s606_s1 + $0x8] sm:$0xff] (%p204_p5)  ;;  %vm318_vm3 = vcmask (%p204_p5), 0  }
  0xfa   : > { %408 = vpush (%p204_p5), %v270_v27  ;;  %v301_v49 = vld [vmem:[#allocation4] sm:$0xff] (%p204_p5)  ;;  %v302_v50 = vld [vmem:[#allocation4 + $0x8] sm:$0xff] (%p204_p5) }
  0xfb   : > { %v275_v30 = vshrl.u32 (%p204_p5), %v274_v29, 7  ;;  %v278_v32 = vand.u32 (%p204_p5), 127, %v274_v29 }
  0xfd   : > { %v276_v31 = vadd.s32 (%p204_p5), 8, %v275_v30  ;;  %v283_v33 = vmul.u32 (%p204_p5), 128, %v275_v30 }
  0xff   : > { %v272_v28 = vld [vmem:[#allocation6] sm:$0x1] (%p204_p5)  ;;  %v284_v34 = vmul.u32 (%p204_p5), 128, %v276_v31  ;;  %v285_v36 = vadd.s32 (%p204_p5), %v283_v33, %v278_v32 }
 0x100   : > { %410 = vpush %v272_v28 }
 0x101   : > { %v286_v37 = vadd.s32 %v284_v34, %v278_v32  ;;  %vm287_vm1 = vcmp.lt.s32.totalorder %v285_v36, 1536 }
 0x103   : > { %vm288_vm2 = vcmp.lt.s32.totalorder %v286_v37, 1536 }
 0x12b   : > { %s409_s20 = spop %408 }
 0x12c   : > { %v289_v35 = vstv %s409_s20 }
 0x12d   : > { %v290_v38 = vsub.f32 %v543_v0, %v289_v35  ;;  %v291_v39 = vsub.f32 %v548_v1, %v289_v35 }
 0x131   : > { %s411_s21 = spop %410 }
 0x132   : > { %v292_v40 = vstv %s411_s21 }
 0x133   : > { %v293_v43 = vmul.f32 %v292_v40, %v290_v38  ;;  %v294_v44 = vmul.f32 %v292_v40, %v291_v39 }
 0x135   : > { %v297_v45 = vsub.f32 %v293_v43, %v295_v41  ;;  %v298_v46 = vsub.f32 %v294_v44, %v296_v42 }
 0x137   : > { %v299_v47 = vsel %vm287_vm1, %v297_v45, 0.0  ;;  %v300_v48 = vsel %vm288_vm2, %v298_v46, 0.0 }
 0x138   : > { %v303_v51 = vmul.f32 %v299_v47, %v299_v47  ;;  %v304_v52 = vmul.f32 %v300_v48, %v300_v48 }
 0x13a   : > { %v305_v53 = vadd.f32 %v303_v51, %v301_v49  ;;  %v306_v54 = vadd.f32 %v304_v52, %v302_v50 }
 0x13c   : > { %v307_v55 = vadd.f32 %v306_v54, %v305_v53 }
 0x13e   : > { %308 = vadd.xlane.f32.xlu0 %v307_v55 }
 0x1cb   : > { %v309_v56 = vpop.xlane.xlu0 %308 }
 0x1cc   : > { %v310_v57 = vrot.slane %v309_v56, 4 }
 0x1ce   : > { %v311_v58 = vadd.f32 %v310_v57, %v309_v56 }
 0x1d0   : > { %v312_v59 = vrot.slane %v311_v58, 2 }
 0x1d2   : > { %v313_v60 = vadd.f32 %v312_v59, %v311_v58 }
 0x1d4   : > { %v314_v61 = vrot.slane %v313_v60, 1 }
 0x1d6   : > { %v315_v62 = vadd.f32 %v314_v61, %v313_v60 }
 0x1d8   : > { %412 = vpush %v315_v62 }
 0x209   : > { %s413_s26 = spop %412 }
 0x20a   : > { %v317_v63 = vstv %s413_s26 }
 0x20b   : > { %319 = vst.msk [vmem:[#allocation7] sm:$0x1] %vm318_vm3, %v317_v63 }
 0x20c PF: > { %p570_p6 = scmp.eq.s32.totalorder %s390_s12, 1  ;;  %s503_s28 = smov [#allocation7]  }
 0x20d   : > { %s327_s29 = sshll.u32 %s503_s28, 4  ;;  %s328_s29 = int_to_ptr.vmem [resolvable:$true] %s327_s29 }
 0x20e   : > { %s448_s30 = scalar_lea.vmem %s328_s29, 16  ;;  %s454_s3 = scalar_lea.vmem %s328_s29, 32 }
 0x20f   : > { %p449_p7 = scmp.ne.s32.totalorder %s328_s29, %s448_s30  ;;  %p455_p10 = scmp.lt.s32.totalorder %s328_s29, %s328_s29 }
 0x210   : > { %p456_p11 = scmp.lt.s32.totalorder %s454_s3, %s448_s30 }
 0x211   : > { %p450_p8 = pnand %p449_p7, %p570_p6 }
 0x212   : > { %p457_p12 = por %p456_p11, %p455_p10 }
 0x213   : > { %p451_p9 = pneg %p450_p8 }
 0x215   : > { %p458_p13 = pnand %p457_p12, %p451_p9 }
 0x217   : > { %461 = shalt.err (!%p458_p13)
}
 0x218   : > { %s462_s6 = scalar_lea.hbm %s607_s2, 16 }
 0x219   : > { %p463_p0 = scmp.ne.s32.totalorder %s607_s2, %s462_s6  ;;  %p468_p3 = scmp.lt.u32.totalorder %s462_s6, %s607_s2 }
 0x21b   : > { %p464_p1 = pnand %p463_p0, %p570_p6 }
 0x21d   : > { %p465_p2 = pneg %p464_p1 }
 0x21f   : > { %p470_p4 = pnand %p468_p3, %p465_p2 }
 0x221   : > { %473 = shalt.err (!%p470_p4)
}
 0x222   : > { %415 = dma.vmem_to_hbm [thread:$0]  (%p570_p6), %s328_s29, 16, %s607_s2, [#allocation8]  }
 0x223   : > { %487 = dma.done.wait (%p570_p6), [#allocation8], 16  }
 0x224   : > { %489 = vsyncadd (%p570_p6), [#allocation8], 4294967280 }
 0x225 PF: > { %s13_s11 = sadd.s32 1, %s500_s11   ;;  %s609_s9 = smov %s496_s10 }
 0x226   : > { %p10_p5 = scmp.ge.s32.totalorder %s13_s11, 4   ;;  %s610_s10 = smov %s612_s13 }
 0x228   :  { %12 = sbr.rel (!%p10_p5) target bundleno = 2 (0x2), region = 78 }
 0x22f   :  { %340 = vsyncpa [#allocation8], 1 }
 0x230   :  { %342 = vsyncpa [#allocation8 + $0x1], 1 }

// kernel: mse_loss_new.2
= control target key start
LH: loop header
LB: loop body
LE: loop exit
PB: predicated region body
PF: predicated region fallthrough
CT: control target
= control target key end

     0   :  { %7 = vsyncpa [#allocation8], 0  ;;  %s473_s9 = smov 0   ;;  %s475_s10 = smov 0   ;;  %s543_s0 = inlined_call_operand.vmem [shape: f32[8,128], index: 0, kind: input, shape index: {}]   ;;  %s544_s1 = inlined_call_operand.vmem [shape: f32[8,128], index: 1, kind: input, shape index: {}]   ;;  %s545_s2 = inlined_call_operand.hbm [shape: f32[1,1], index: 2, kind: output, shape index: {}]  }
   0x1   :  { %s477_s11 = smov 0  }
   0x2 LB: > { %s344_s12 = sadd.s32 4294967295, %s454_s11   ;;  %s25_s13 = sadd.s32 1, %s450_s10  ;;  %s454_s11 = sphi %s477_s11, %s13_s11   ;;  %s450_s10 = sphi %s475_s10, %s548_s10   ;;  %s446_s9 = sphi %s473_s9, %s547_s9  }
   0x3   : > { %p27_p0 = scmp.ge.s32.totalorder %s25_s13, 2  ;;  %p349_p1 = scmp.ge.s32.totalorder %s454_s11, 1 }
   0x4   : > { %p132_p2 = scmp.lt.s32.totalorder %s454_s11, 3 }
   0x5   : > { %s550_s13 = smov (%p27_p0, %s25_s13), 0 }
   0x6   : > { %p133_p3 = pnand %p349_p1, %p132_p2 }
   0x7   : > { %v163_v0 = vld [vmem:[%s543_s0] sm:$0xff] (!%p133_p3)  ;;  %p164_p4 = scmp.eq.s32.totalorder (!%p133_p3), %s446_s9, 0 }
   0x8   : > { %136 = sbr.rel (%p133_p3) target bundleno = 545 (0x221), region = 28 }
   0xf   : > { %169 = sbr.rel (!%p164_p4) target bundleno = 22 (0x16), region = 32  ;;  %170 = vst [vmem:[#allocation2] sm:$0xff] (%p164_p4), %v163_v0  ;;  %171 = vst [vmem:[#allocation3] sm:$0xff] (%p164_p4), %v163_v0  ;;  %v456_v1 = vmov (%p164_p4), 0.0  }
  0x10   : > { %172 = vst [vmem:[#allocation4] sm:$0xff] (%p164_p4), %v456_v1 }
  0x16 PF: > { %p184_p5 = scmp.eq.s32.totalorder %s446_s9, 1 }
  0x17   : > { %v189_v2 = vld [vmem:[#allocation2] sm:$0xff] (%p184_p5)  ;;  %v200_v3 = vld [vmem:[#allocation3] sm:$0xff] (%p184_p5)  ;;  %vm211_vm0 = vcmask (%p184_p5), 0  }
  0x18   : > { %188 = sbr.rel (!%p184_p5) target bundleno = 247 (0xf7), region = 40  ;;  %190 = vmin.xlane.f32.xlu0 (%p184_p5), %v189_v2 }
  0x1c   : > { %201 = vmax.xlane.f32.xlu0 (%p184_p5), %v200_v3 }
  0xa5   : > { %v191_v4 = vpop.xlane.xlu0 %190 }
  0xa6   : > { %v192_v5 = vrot.slane %v191_v4, 4 }
  0xa8   : > { %v193_v6 = vmin.f32 %v191_v4, %v192_v5 }
  0xa9   : > { %v202_v7 = vpop.xlane.xlu0 %201 }
  0xaa   : > { %v194_v8 = vrot.slane %v193_v6, 2  ;;  %v203_v9 = vrot.slane %v202_v7, 4 }
  0xac   : > { %v204_v10 = vmax.f32 %v202_v7, %v203_v9  ;;  %v195_v11 = vmin.f32 %v193_v6, %v194_v8 }
  0xae   : > { %v205_v12 = vrot.slane %v204_v10, 2  ;;  %v196_v13 = vrot.slane %v195_v11, 1 }
  0xb0   : > { %v206_v14 = vmax.f32 %v204_v10, %v205_v12  ;;  %v197_v15 = vmin.f32 %v195_v11, %v196_v13 }
  0xb2   : > { %358 = vpush %v197_v15  ;;  %v207_v16 = vrot.slane %v206_v14, 1 }
  0xb4   : > { %v208_v17 = vmax.f32 %v206_v14, %v207_v16 }
  0xb6   : > { %360 = vpush %v208_v17 }
  0xe3   : > { %s359_s16 = spop %358 }
  0xe4   : > { %v199_v18 = vstv %s359_s16 }
  0xe5   : > { %212 = vst.msk [vmem:[#allocation5] sm:$0x1] %vm211_vm0, %v199_v18 }
  0xe7   : > { %s361_s17 = spop %360 }
  0xe8   : > { %v210_v19 = vstv %s361_s17 }
  0xe9   : > { %v213_v20 = vsub.f32 %v210_v19, %v199_v18 }
  0xeb   : > { %400 = vrcp.f32 %v213_v20 }
  0xf5   : > { %v401_v21 = vpop.eup %400 }
  0xf6   : > { %216 = vst.msk [vmem:[#allocation6] sm:$0x1] %vm211_vm0, %v401_v21 }
  0xf7 PF: > { %237 = sbr.rel (!%p184_p5) target bundleno = 520 (0x208), region = 48  ;;  %v238_v22 = vld [vmem:[#allocation5] sm:$0x1] (%p184_p5)  ;;  %v242_v24 = vlaneseq (%p184_p5)  ;;  %v256_v32 = vld [vmem:[%s544_s1] sm:$0xff] (%p184_p5)  ;;  %v259_v36 = vld [vmem:[#allocation4] sm:$0xff] (%p184_p5)  ;;  %vm272_vm2 = vcmask (%p184_p5), 0  }
  0xf8   : > { %362 = vpush (%p184_p5), %v238_v22 }
  0xf9   : > { %v243_v25 = vshrl.u32 (%p184_p5), %v242_v24, 7  ;;  %v245_v26 = vand.u32 (%p184_p5), 127, %v242_v24 }
  0xfb   : > { %v249_v27 = vmul.u32 (%p184_p5), 128, %v243_v25 }
  0xfd   : > { %v240_v23 = vld [vmem:[#allocation6] sm:$0x1] (%p184_p5)  ;;  %v250_v29 = vadd.s32 (%p184_p5), %v249_v27, %v245_v26 }
  0xfe   : > { %364 = vpush %v240_v23 }
  0xff   : > { %vm251_vm1 = vcmp.lt.s32.totalorder %v250_v29, 512 }
 0x129   : > { %s363_s18 = spop %362 }
 0x12a   : > { %v252_v28 = vstv %s363_s18 }
 0x12b   : > { %v253_v30 = vsub.f32 %v163_v0, %v252_v28 }
 0x12f   : > { %s365_s19 = spop %364 }
 0x130   : > { %v254_v31 = vstv %s365_s19 }
 0x131   : > { %v255_v33 = vmul.f32 %v254_v31, %v253_v30 }
 0x133   : > { %v257_v34 = vsub.f32 %v255_v33, %v256_v32 }
 0x135   : > { %v258_v35 = vsel %vm251_vm1, %v257_v34, 0.0 }
 0x136   : > { %v260_v37 = vmul.f32 %v258_v35, %v258_v35 }
 0x138   : > { %v261_v38 = vadd.f32 %v260_v37, %v259_v36 }
 0x13a   : > { %262 = vadd.xlane.f32.xlu0 %v261_v38 }
 0x1c7   : > { %v263_v39 = vpop.xlane.xlu0 %262 }
 0x1c8   : > { %v264_v40 = vrot.slane %v263_v39, 4 }
 0x1ca   : > { %v265_v41 = vadd.f32 %v264_v40, %v263_v39 }
 0x1cc   : > { %v266_v42 = vrot.slane %v265_v41, 2 }
 0x1ce   : > { %v267_v43 = vadd.f32 %v266_v42, %v265_v41 }
 0x1d0   : > { %v268_v44 = vrot.slane %v267_v43, 1 }
 0x1d2   : > { %v269_v45 = vadd.f32 %v268_v44, %v267_v43 }
 0x1d4   : > { %366 = vpush %v269_v45 }
 0x205   : > { %s367_s22 = spop %366 }
 0x206   : > { %v271_v46 = vstv %s367_s22 }
 0x207   : > { %273 = vst.msk [vmem:[#allocation7] sm:$0x1] %vm272_vm2, %v271_v46 }
 0x208 PF: > { %p508_p6 = scmp.eq.s32.totalorder %s344_s12, 1  ;;  %s457_s24 = smov [#allocation7]  }
 0x209   : > { %s281_s25 = sshll.u32 %s457_s24, 4  ;;  %s282_s25 = int_to_ptr.vmem [resolvable:$true] %s281_s25 }
 0x20a   : > { %s402_s26 = scalar_lea.vmem %s282_s25, 16  ;;  %s408_s27 = scalar_lea.vmem %s282_s25, 32 }
 0x20b   : > { %p403_p7 = scmp.ne.s32.totalorder %s282_s25, %s402_s26  ;;  %p409_p10 = scmp.lt.s32.totalorder %s282_s25, %s282_s25 }
 0x20c   : > { %p410_p11 = scmp.lt.s32.totalorder %s408_s27, %s402_s26 }
 0x20d   : > { %p404_p8 = pnand %p403_p7, %p508_p6 }
 0x20e   : > { %p411_p12 = por %p410_p11, %p409_p10 }
 0x20f   : > { %p405_p9 = pneg %p404_p8 }
 0x211   : > { %p412_p13 = pnand %p411_p12, %p405_p9 }
 0x213   : > { %415 = shalt.err (!%p412_p13)
}
 0x214   : > { %s416_s30 = scalar_lea.hbm %s545_s2, 16 }
 0x215   : > { %p417_p0 = scmp.ne.s32.totalorder %s545_s2, %s416_s30  ;;  %p422_p3 = scmp.lt.u32.totalorder %s416_s30, %s545_s2 }
 0x217   : > { %p418_p1 = pnand %p417_p0, %p508_p6 }
 0x219   : > { %p419_p2 = pneg %p418_p1 }
 0x21b   : > { %p424_p4 = pnand %p422_p3, %p419_p2 }
 0x21d   : > { %427 = shalt.err (!%p424_p4)
}
 0x21e   : > { %369 = dma.vmem_to_hbm [thread:$0]  (%p508_p6), %s282_s25, 16, %s545_s2, [#allocation8]  }
 0x21f   : > { %441 = dma.done.wait (%p508_p6), [#allocation8], 16  }
 0x220   : > { %443 = vsyncadd (%p508_p6), [#allocation8], 4294967280 }
 0x221 PF: > { %s13_s11 = sadd.s32 1, %s454_s11   ;;  %s547_s9 = smov %s450_s10 }
 0x222   : > { %p10_p5 = scmp.ge.s32.totalorder %s13_s11, 4   ;;  %s548_s10 = smov %s550_s13 }
 0x224   :  { %12 = sbr.rel (!%p10_p5) target bundleno = 2 (0x2), region = 78 }
 0x22b   :  { %294 = vsyncpa [#allocation8], 1 }
 0x22c   :  { %296 = vsyncpa [#allocation8 + $0x1], 1 }

</bundles_post_ra>
